<compile_context>
chip_gen: v7x
topology: tpu7x:2x2x1
jax: 0.10.0
libtpu: 0.0.40
codegen_flags: <defaults>
</compile_context>

<pallas_src>
import functools
import math

import jax
import jax.numpy as jnp
from jax.experimental import pallas as pl
from jax.experimental.pallas import tpu as pltpu


def _round_up(v, m):
    return ((v + m - 1) // m) * m


def _pad_to(a, shape):
    pads = [(0, s - d) for d, s in zip(a.shape, shape)]
    return jnp.pad(a, pads)


def _choose_tiles(n, tm_desired=256, tk_desired=1024):
    """Pick row/neighbor tile sizes and the padded node count.

    Tiles are clamped to the (256-aligned) padded node count, and the final
    padding goes to lcm(tm, tk) so both tile sizes always divide Np exactly
    (fixes the mis-cover risk when tm does not divide tk).
    """
    align = 256
    np0 = _round_up(max(n, align), align)
    tm = min(tm_desired, np0)
    tk = min(tk_desired, np0)
    l = (tm * tk) // math.gcd(tm, tk)
    np_pad = _round_up(max(n, l), l)
    return np_pad, tm, tk


def sage_layer_kernel(adj_ref, xk_ref, xi_ref, invdeg_ref, wl_ref, wr_ref,
                      b_ref, o_ref, acc_ref, *, apply_relu):
    """One (row-tile, k-tile) grid step of a SAGEConv layer.

    adj_ref : (TM, TK)   bf16  0/1 adjacency tile (dominant HBM stream)
    xk_ref  : (TK, Fin)  bf16  neighbor features for this k slab
    xi_ref  : (TM, Fin)  bf16  self features for this row tile (same array)
    invdeg  : (TM, 1)    f32   1/deg (0 for isolated nodes), precomputed
    wl/wr   : (Fin, Fout) bf16 lin_l / lin_r weights (lane-padded, resident)
    b_ref   : (1, Fout)  f32   lin_l bias
    acc_ref : (TM, Fin)  f32   scratch accumulator for sum_j adj[i,j] * x[j]
    """
    k = pl.program_id(1)

    @pl.when(k == 0)
    def _():
        acc_ref[...] = jnp.zeros_like(acc_ref)

    # Dominant matmul: bf16 x bf16 -> f32 accumulation on the MXU.
    acc_ref[...] += jnp.dot(adj_ref[...], xk_ref[...],
                            preferred_element_type=jnp.float32)

    @pl.when(k == pl.num_programs(1) - 1)
    def _():
        # mean aggregation = accumulated neighbor sum * (1 / degree)
        agg = (acc_ref[...] * invdeg_ref[...]).astype(jnp.bfloat16)
        # Finalize matmuls on the native bf16 MXU path, f32 accumulation.
        h = jnp.dot(agg, wl_ref[...], preferred_element_type=jnp.float32)
        h = h + jnp.dot(xi_ref[...], wr_ref[...],
                        preferred_element_type=jnp.float32)
        h = h + b_ref[...]                                   # (1, Fout) bcast
        if apply_relu:
            h = jnp.maximum(h, 0.0)
        o_ref[...] = h.astype(o_ref.dtype)


def sage_layer(x_bf16, adj_bf16, inv_deg, w_l, w_r, b, *, apply_relu,
               out_dtype, tm, tk):
    """One SAGEConv layer (+ optional fused ReLU).  All inputs pre-padded:
       adj (Np, Np) bf16, x (Np, Fin_p) bf16, weights (Fin_p, Fout_p) bf16,
       bias (1, Fout_p) f32; Np % tm == 0, Np % tk == 0, Fin_p/Fout_p
       multiples of 128 (so output stores are unmasked, lane-dense)."""
    np_pad = adj_bf16.shape[0]
    fin = x_bf16.shape[1]
    fout = w_l.shape[1]
    grid = (np_pad // tm, np_pad // tk)

    kernel = functools.partial(sage_layer_kernel, apply_relu=apply_relu)

    # Bytes: adjacency streamed once; the x neighbor slab is re-read once per
    # row tile (Np/tm re-stream factor) plus the self tile read.
    restream = np_pad // tm
    out_itemsize = jnp.dtype(out_dtype).itemsize
    bytes_accessed = int(adj_bf16.size * 2
                         + x_bf16.size * 2 * (restream + 1)
                         + inv_deg.size * 4
                         + (w_l.size + w_r.size) * 2 + b.size * 4
                         + np_pad * fout * out_itemsize)
    flops = int(2 * np_pad * np_pad * fin + 4 * np_pad * fin * fout)

    # Explicit VMEM budget (double-buffered streamed inputs + resident
    # bf16 weights + f32 scratch), clamped to fit every generation.
    vmem_est = (2 * tm * tk * 2            # adj tiles (bf16, double-buffered)
                + 2 * tk * fin * 2         # neighbor slabs
                + 2 * tm * fin * 2         # self tiles
                + 2 * tm * 128 * 4         # inv_deg (lane-padded)
                + 2 * (2 * fin * fout * 2  # W_l + W_r (bf16)
                       + 128 * fout * 4)   # bias
                + 2 * tm * fout * out_itemsize   # output tiles
                + tm * fin * 4)            # accumulator scratch
    vmem_limit = int(min(max(vmem_est * 2, 32 * 1024 * 1024),
                         56 * 1024 * 1024))

    return pl.pallas_call(
        kernel,
        out_shape=jax.ShapeDtypeStruct((np_pad, fout), out_dtype),
        grid=grid,
        in_specs=[
            pl.BlockSpec((tm, tk), lambda i, k: (i, k)),      # adj tile
            pl.BlockSpec((tk, fin), lambda i, k: (k, 0)),     # x neighbor slab
            pl.BlockSpec((tm, fin), lambda i, k: (i, 0)),     # x self tile
            pl.BlockSpec((tm, 1), lambda i, k: (i, 0)),       # inv_deg
            pl.BlockSpec((fin, fout), lambda i, k: (0, 0)),   # W_l (resident)
            pl.BlockSpec((fin, fout), lambda i, k: (0, 0)),   # W_r (resident)
            pl.BlockSpec((1, fout), lambda i, k: (0, 0)),     # bias (resident)
        ],
        out_specs=pl.BlockSpec((tm, fout), lambda i, k: (i, 0)),
        scratch_shapes=[pltpu.VMEM((tm, fin), jnp.float32)],
        compiler_params=pltpu.CompilerParams(
            dimension_semantics=("parallel", "arbitrary"),
            vmem_limit_bytes=vmem_limit),
        cost_estimate=pl.CostEstimate(flops=flops, transcendentals=0,
                                      bytes_accessed=bytes_accessed),
    )(adj_bf16, x_bf16, x_bf16, inv_deg, w_l, w_r, b)


def preprocess_graph(adj, tm_desired=256, tk_desired=1024):
    """One-time preprocessing for a static graph (hoisted out of forward):
    degree normalization, node-dim padding, and the lossless 0/1 bf16 cast."""
    n = adj.shape[0]
    np_pad, tm, tk = _choose_tiles(n, tm_desired, tk_desired)

    deg = jnp.sum(adj, axis=1, keepdims=True)                 # (N, 1)
    inv_deg = jnp.where(deg > 0, 1.0 / deg, 0.0).astype(jnp.float32)
    inv_deg_p = _pad_to(inv_deg, (np_pad, 1))

    # Adjacency stays exact 0/1, so the bf16 cast is lossless.
    # TODO(synk): int8 adjacency + integer MXU path for v5e/v6e (fp8-e4m3 on
    #             v7x) to halve the dominant Np^2 HBM stream.
    adj_p = _pad_to(adj, (np_pad, np_pad)).astype(jnp.bfloat16)

    return {"adj": adj_p, "inv_deg": inv_deg_p, "n": n, "np": np_pad,
            "tm": tm, "tk": tk}


def pad_params(params):
    """Pad weights to 128-lane multiples, cast to bf16 (bias stays f32)."""
    padded = []
    for w_l, w_r, b in params:
        fin, fout = w_l.shape
        fin_p = _round_up(fin, 128)
        fout_p = _round_up(fout, 128)
        padded.append((
            _pad_to(w_l, (fin_p, fout_p)).astype(jnp.bfloat16),
            _pad_to(w_r, (fin_p, fout_p)).astype(jnp.bfloat16),
            _pad_to(b.reshape(1, -1), (1, fout_p)).astype(jnp.float32),
        ))
    return padded


def init_sage_params(key, in_channels, hidden_channels, out_channels,
                     num_layers):
    """Deterministic Glorot-style init matching SAGEConv parameter shapes."""
    dims = [in_channels] + [hidden_channels] * (num_layers - 1) + [out_channels]
    params = []
    for layer in range(num_layers):
        fin, fout = dims[layer], dims[layer + 1]
        key, k1, k2 = jax.random.split(key, 3)
        scale = (6.0 / (fin + fout)) ** 0.5
        w_l = jax.random.uniform(k1, (fin, fout), jnp.float32, -scale, scale)
        w_r = jax.random.uniform(k2, (fin, fout), jnp.float32, -scale, scale)
        b = jnp.zeros((1, fout), jnp.float32)
        params.append((w_l, w_r, b))
    return params


def sage_forward(x, graph, params_padded, out_channels,
                 dropout_p=0.5, training=False):
    """Full SAGE forward on a preprocessed static graph.

    Dropout is identity in eval mode (training=False), which is what we run.
    """
    # TODO(synk): training-mode dropout (pltpu.prng_random_bits mask) not wired in.
    del dropout_p, training

    n, np_pad = graph["n"], graph["np"]
    fin0_p = params_padded[0][0].shape[0]

    # Single bf16 activation stream; padded once at the entry.
    h = _pad_to(x, (np_pad, fin0_p)).astype(jnp.bfloat16)

    n_layers = len(params_padded)
    for li, (w_l, w_r, b) in enumerate(params_padded):
        last = li == n_layers - 1
        h = sage_layer(h, graph["adj"], graph["inv_deg"], w_l, w_r, b,
                       apply_relu=not last,
                       out_dtype=jnp.float32 if last else jnp.bfloat16,
                       tm=graph["tm"], tk=graph["tk"])

    return h[:n, :out_channels]


def sage_forward_ref(x, adj, params):
    """Pure-JAX f32 reference (PyG SAGEConv mean aggregation)."""
    deg = jnp.sum(adj, axis=1, keepdims=True)
    inv = jnp.where(deg > 0, 1.0 / deg, 0.0)
    h = x
    for li, (w_l, w_r, b) in enumerate(params):
        agg = (adj @ h) * inv
        h_new = agg @ w_l + h @ w_r + b
        if li < len(params) - 1:
            h_new = jax.nn.relu(h_new)
        h = h_new
    return h


if __name__ == "__main__":
    # Small, module-consistent shapes (N padded 200 -> 256 => tm=tk=256 tiles).
    N = 200
    in_channels = 8
    hidden_channels = 32
    out_channels = 16
    num_layers = 3
    dropout = 0.5

    key = jax.random.PRNGKey(0)
    kx, kadj, kparam = jax.random.split(key, 3)

    x = jax.random.normal(kx, (N, in_channels), jnp.float32)
    adj_raw = (jax.random.uniform(kadj, (N, N)) > 0.9).astype(jnp.float32)
    adj = jnp.maximum(adj_raw, adj_raw.T)          # undirected 0/1 adjacency

    params = init_sage_params(kparam, in_channels, hidden_channels,
                              out_channels, num_layers)

    # Hoisted one-time preprocessing for the static graph / static weights.
    graph = preprocess_graph(adj)
    params_p = pad_params(params)

    out = sage_forward(x, graph, params_p, out_channels,
                       dropout_p=dropout, training=False)
    out = jax.block_until_ready(out)

    assert out.shape == (N, out_channels), out.shape
    assert bool(jnp.all(jnp.isfinite(out)))

    # Loose numeric sanity check against the f32 reference (bf16 activation
    # and weight streams -> sub-percent expected error).
    ref = sage_forward_ref(x, adj, params)
    rel = float(jnp.max(jnp.abs(out - ref)) / (jnp.max(jnp.abs(ref)) + 1e-6))
    assert rel < 0.05, f"relative error too large: {rel}"

    print("KERNEL_OK")
</pallas_src>

<mosaic_0001>
module attributes {stable_mosaic.version = 11 : i64} {
  func.func @sage_layer_kernel(%arg0: i32, %arg1: i32, %arg2: memref<256x256xbf16, #tpu.memory_space<vmem>>, %arg3: memref<256x128xbf16, #tpu.memory_space<vmem>>, %arg4: memref<256x128xbf16, #tpu.memory_space<vmem>>, %arg5: memref<256x1xf32, #tpu.memory_space<vmem>>, %arg6: memref<128x128xbf16, #tpu.memory_space<vmem>>, %arg7: memref<128x128xbf16, #tpu.memory_space<vmem>>, %arg8: memref<1x128xf32, #tpu.memory_space<vmem>>, %arg9: memref<256x128xbf16, #tpu.memory_space<vmem>>, %arg10: memref<256x128xf32, #tpu.memory_space<vmem>>) attributes {dimension_semantics = [#tpu.dimension_semantics<parallel>, #tpu.dimension_semantics<arbitrary>], iteration_bounds = array<i64: 1, 1>, scalar_prefetch = 0 : i64, scratch_operands = 1 : i64, tpu.core_type = #tpu.core_type<tc>, window_params = [{transform_indices = @transform_0, window_bounds = array<i64: 256, 256>}, {transform_indices = @transform_1, window_bounds = array<i64: 256, 128>}, {transform_indices = @transform_2, window_bounds = array<i64: 256, 128>}, {transform_indices = @transform_3, window_bounds = array<i64: 256, 1>}, {pipeline_mode = #tpu.pipeline_mode<synchronous>, transform_indices = @transform_4, window_bounds = array<i64: 128, 128>}, {pipeline_mode = #tpu.pipeline_mode<synchronous>, transform_indices = @transform_5, window_bounds = array<i64: 128, 128>}, {pipeline_mode = #tpu.pipeline_mode<synchronous>, transform_indices = @transform_6, window_bounds = array<i64: 1, 128>}, {transform_indices = @transform_7, window_bounds = array<i64: 256, 128>}]} {
    %c0_i32 = arith.constant 0 : i32
    %0 = arith.cmpi eq, %arg1, %c0_i32 : i32
    %1 = arith.extui %0 : i1 to i32
    %c0_i32_0 = arith.constant 0 : i32
    %2 = arith.cmpi ne, %1, %c0_i32_0 : i32
    scf.if %2 {
      %cst_10 = arith.constant 0.000000e+00 : f32
      %12 = vector.broadcast %cst_10 : f32 to vector<256x128xf32>
      %c0_11 = arith.constant 0 : index
      %c0_12 = arith.constant 0 : index
      %13 = vector.load %arg10[%c0_11, %c0_12] : memref<256x128xf32, #tpu.memory_space<vmem>>, vector<256x128xf32>
      tpu.vector_store %arg10[%c0_11, %c0_12], %12 {strides = array<i32>} : memref<256x128xf32, #tpu.memory_space<vmem>>, vector<256x128xf32>,
    } else {
    }
    %c0 = arith.constant 0 : index
    %c0_1 = arith.constant 0 : index
    %3 = vector.load %arg10[%c0, %c0_1] : memref<256x128xf32, #tpu.memory_space<vmem>>, vector<256x128xf32>
    %c0_2 = arith.constant 0 : index
    %c0_3 = arith.constant 0 : index
    %4 = vector.load %arg2[%c0_2, %c0_3] : memref<256x256xbf16, #tpu.memory_space<vmem>>, vector<256x256xbf16>
    %c0_4 = arith.constant 0 : index
    %c0_5 = arith.constant 0 : index
    %5 = vector.load %arg3[%c0_4, %c0_5] : memref<256x128xbf16, #tpu.memory_space<vmem>>, vector<256x128xbf16>
    %cst = arith.constant dense<0.000000e+00> : vector<256x128xf32>
    %6 = tpu.matmul %4, %5, %cst {dimension_numbers = #tpu.dot_dimension_numbers<[1], [0], [0], [1], [0, 0, 1, 1], [], []>} : vector<256x256xbf16>, vector<256x128xbf16>, vector<256x128xf32> -> vector<256x128xf32>
    %7 = arith.addf %3, %6 : vector<256x128xf32>
    %c0_6 = arith.constant 0 : index
    %c0_7 = arith.constant 0 : index
    %8 = vector.load %arg10[%c0_6, %c0_7] : memref<256x128xf32, #tpu.memory_space<vmem>>, vector<256x128xf32>
    tpu.vector_store %arg10[%c0_6, %c0_7], %7 {strides = array<i32>} : memref<256x128xf32, #tpu.memory_space<vmem>>, vector<256x128xf32>,
    %c0_i32_8 = arith.constant 0 : i32
    %9 = arith.cmpi eq, %arg1, %c0_i32_8 : i32
    %10 = arith.extui %9 : i1 to i32
    %c0_i32_9 = arith.constant 0 : i32
    %11 = arith.cmpi ne, %10, %c0_i32_9 : i32
    scf.if %11 {
      %c0_10 = arith.constant 0 : index
      %c0_11 = arith.constant 0 : index
      %12 = vector.load %arg10[%c0_10, %c0_11] : memref<256x128xf32, #tpu.memory_space<vmem>>, vector<256x128xf32>
      %c0_12 = arith.constant 0 : index
      %c0_13 = arith.constant 0 : index
      %13 = vector.load %arg5[%c0_12, %c0_13] : memref<256x1xf32, #tpu.memory_space<vmem>>, vector<256x1xf32>
      %14 = vector.broadcast %13 : vector<256x1xf32> to vector<256x128xf32>
      %15 = arith.mulf %12, %14 : vector<256x128xf32>
      %16 = arith.truncf %15 : vector<256x128xf32> to vector<256x128xbf16>
      %c0_14 = arith.constant 0 : index
      %c0_15 = arith.constant 0 : index
      %17 = vector.load %arg6[%c0_14, %c0_15] : memref<128x128xbf16, #tpu.memory_space<vmem>>, vector<128x128xbf16>
      %cst_16 = arith.constant dense<0.000000e+00> : vector<256x128xf32>
      %18 = tpu.matmul %16, %17, %cst_16 {dimension_numbers = #tpu.dot_dimension_numbers<[1], [0], [0], [1], [0, 0, 1, 1], [], []>} : vector<256x128xbf16>, vector<128x128xbf16>, vector<256x128xf32> -> vector<256x128xf32>
      %c0_17 = arith.constant 0 : index
      %c0_18 = arith.constant 0 : index
      %19 = vector.load %arg4[%c0_17, %c0_18] : memref<256x128xbf16, #tpu.memory_space<vmem>>, vector<256x128xbf16>
      %c0_19 = arith.constant 0 : index
      %c0_20 = arith.constant 0 : index
      %20 = vector.load %arg7[%c0_19, %c0_20] : memref<128x128xbf16, #tpu.memory_space<vmem>>, vector<128x128xbf16>
      %cst_21 = arith.constant dense<0.000000e+00> : vector<256x128xf32>
      %21 = tpu.matmul %19, %20, %cst_21 {dimension_numbers = #tpu.dot_dimension_numbers<[1], [0], [0], [1], [0, 0, 1, 1], [], []>} : vector<256x128xbf16>, vector<128x128xbf16>, vector<256x128xf32> -> vector<256x128xf32>
      %22 = arith.addf %18, %21 : vector<256x128xf32>
      %c0_22 = arith.constant 0 : index
      %c0_23 = arith.constant 0 : index
      %23 = vector.load %arg8[%c0_22, %c0_23] : memref<1x128xf32, #tpu.memory_space<vmem>>, vector<1x128xf32>
      %24 = vector.broadcast %23 : vector<1x128xf32> to vector<256x128xf32>
      %25 = arith.addf %22, %24 : vector<256x128xf32>
      %cst_24 = arith.constant 0.000000e+00 : f32
      %26 = vector.broadcast %cst_24 : f32 to vector<256x128xf32>
      %27 = arith.maximumf %25, %26 : vector<256x128xf32>
      %28 = arith.truncf %27 : vector<256x128xf32> to vector<256x128xbf16>
      %c0_25 = arith.constant 0 : index
      %c0_26 = arith.constant 0 : index
      %29 = vector.load %arg9[%c0_25, %c0_26] : memref<256x128xbf16, #tpu.memory_space<vmem>>, vector<256x128xbf16>
      tpu.vector_store %arg9[%c0_25, %c0_26], %28 {strides = array<i32>} : memref<256x128xbf16, #tpu.memory_space<vmem>>, vector<256x128xbf16>,
    } else {
    }
    return
  }
  func.func @transform_0(%arg0: i32, %arg1: i32) -> (i32, i32) {
    %c0_i32 = arith.constant 0 : i32
    return %arg0, %arg1 : i32, i32
  }
  func.func @transform_1(%arg0: i32, %arg1: i32) -> (i32, i32) {
    %c0_i32 = arith.constant 0 : i32
    %c0_i32_0 = arith.constant 0 : i32
    return %arg1, %c0_i32 : i32, i32
  }
  func.func @transform_2(%arg0: i32, %arg1: i32) -> (i32, i32) {
    %c0_i32 = arith.constant 0 : i32
    %c0_i32_0 = arith.constant 0 : i32
    return %arg0, %c0_i32 : i32, i32
  }
  func.func @transform_3(%arg0: i32, %arg1: i32) -> (i32, i32) {
    %c0_i32 = arith.constant 0 : i32
    %c0_i32_0 = arith.constant 0 : i32
    return %arg0, %c0_i32 : i32, i32
  }
  func.func @transform_4(%arg0: i32, %arg1: i32) -> (i32, i32) {
    %c0_i32 = arith.constant 0 : i32
    %c0_i32_0 = arith.constant 0 : i32
    %c0_i32_1 = arith.constant 0 : i32
    return %c0_i32, %c0_i32_0 : i32, i32
  }
  func.func @transform_5(%arg0: i32, %arg1: i32) -> (i32, i32) {
    %c0_i32 = arith.constant 0 : i32
    %c0_i32_0 = arith.constant 0 : i32
    %c0_i32_1 = arith.constant 0 : i32
    return %c0_i32, %c0_i32_0 : i32, i32
  }
  func.func @transform_6(%arg0: i32, %arg1: i32) -> (i32, i32) {
    %c0_i32 = arith.constant 0 : i32
    %c0_i32_0 = arith.constant 0 : i32
    %c0_i32_1 = arith.constant 0 : i32
    return %c0_i32, %c0_i32_0 : i32, i32
  }
  func.func @transform_7(%arg0: i32, %arg1: i32) -> (i32, i32) {
    %c0_i32 = arith.constant 0 : i32
    %c0_i32_0 = arith.constant 0 : i32
    return %arg0, %c0_i32 : i32, i32
  }
}

</mosaic_0001>

<bundles_post_ra>
// kernel: tpu_custom_call.1
= control target key start
LH: loop header
LB: loop body
LE: loop exit
PB: predicated region body
PF: predicated region fallthrough
CT: control target
= control target key end

     0   :  { %12 = vsyncpa [#allocation4], 0  ;;  %s2917_s0 = inlined_call_operand.vmem [shape: bf16[256,256], index: 0, kind: input, shape index: {}]   ;;  %s2918_s1 = inlined_call_operand.hbm [shape: bf16[256,128], index: 1, kind: input, shape index: {}]   ;;  %s2919_s2 = inlined_call_operand.hbm [shape: bf16[256,128], index: 2, kind: input, shape index: {}]   ;;  %s2920_s3 = inlined_call_operand.vmem [shape: f32[256,1], index: 3, kind: input, shape index: {}]   ;;  %s2921_s4 = inlined_call_operand.hbm [shape: bf16[128,128], index: 4, kind: input, shape index: {}]   ;;  %s2922_s5 = inlined_call_operand.hbm [shape: bf16[128,128], index: 5, kind: input, shape index: {}]   ;;  %s2923_s6 = inlined_call_operand.vmem [shape: f32[1,128], index: 6, kind: input, shape index: {}]   ;;  %s2924_s7 = inlined_call_operand.hbm [shape: bf16[256,128], index: 7, kind: output, shape index: {}]  }
   0x1   :  { %13 = vsyncpa [#allocation7], 0 }
   0x2   :  { %14 = vsyncpa [#allocation10], 0 }
   0x3   :  { %15 = vsyncpa [#allocation5], 0  ;;  %s2551_s24 = smov [#allocation6]   ;;  %s2552_s26 = smov [#allocation3]  }
   0x4   :  { %s35_s25 = sshll.u32 %s2551_s24, 4  ;;  %s23_s27 = sshll.u32 %s2552_s26, 4  ;;  %s36_s25 = int_to_ptr.vmem [resolvable:$true] %s35_s25  ;;  %s2599_s27 = int_to_ptr.vmem [resolvable:$true] %s23_s27 }
   0x5   :  { %s2433_s30 = scalar_lea.hbm %s2919_s2, 2048 }
   0x6   :  { %p2434_p0 = scmp.ne.s32.totalorder %s2919_s2, %s2433_s30  ;;  %p2437_p1 = scmp.lt.u32.totalorder %s2433_s30, %s2919_s2 }
   0x8   :  { %p2439_p2 = pnand %p2437_p1, %p2434_p0 }
   0xa   :  { %2442 = shalt.err (!%p2439_p2)
}
   0xb   :  { %s2443_s12 = scalar_lea.vmem %s36_s25, 2048  ;;  %p2448_p4 = scmp.lt.s32.totalorder %s36_s25, %s36_s25 }
   0xc   :  { %p2444_p3 = scmp.ne.s32.totalorder %s36_s25, %s2443_s12  ;;  %p2449_p5 = scmp.lt.s32.totalorder %s2443_s12, %s2443_s12 }
   0xe   :  { %p2450_p6 = por %p2449_p5, %p2448_p4 }
  0x10   :  { %p2451_p7 = pnand %p2450_p6, %p2444_p3 }
  0x12   :  { %2454 = shalt.err (!%p2451_p7)
}
  0x13   :  { %s2553_s13 = smov 64   ;;  %s2554_s14 = smov 4  }
  0x14   :  { %41 = dma.hbm_to_vmem [thread:$0]  %s2919_s2, 2048, %s36_s25, [#allocation7], %s2553_s13, %s2553_s13, %s2554_s14  }
  0x15   :  { %s2455_s19 = scalar_lea.hbm %s2918_s1, 2048 }
  0x16   :  { %p2456_p8 = scmp.ne.s32.totalorder %s2918_s1, %s2455_s19  ;;  %p2459_p9 = scmp.lt.u32.totalorder %s2455_s19, %s2918_s1 }
  0x18   :  { %p2461_p10 = pnand %p2459_p9, %p2456_p8 }
  0x1a   :  { %2464 = shalt.err (!%p2461_p10)
}
  0x1b   :  { %s2465_s24 = scalar_lea.vmem %s2599_s27, 2048  ;;  %p2470_p12 = scmp.lt.s32.totalorder %s2599_s27, %s2599_s27 }
  0x1c   :  { %p2466_p11 = scmp.ne.s32.totalorder %s2599_s27, %s2465_s24  ;;  %p2471_p13 = scmp.lt.s32.totalorder %s2465_s24, %s2465_s24 }
  0x1e   :  { %p2472_p0 = por %p2471_p13, %p2470_p12 }
  0x20   :  { %p2473_p1 = pnand %p2472_p0, %p2466_p11 }
  0x22   :  { %2476 = shalt.err (!%p2473_p1)
}
  0x23   :  { %29 = dma.hbm_to_vmem [thread:$0]  %s2918_s1, 2048, %s2599_s27, [#allocation4], %s2553_s13, %s2553_s13, %s2554_s14  }
  0x24   :  { %s2555_s26 = smov [#allocation8]   ;;  %s2556_s29 = smov [#allocation9]  }
  0x25   :  { %s49_s28 = sshll.u32 %s2555_s26, 4  ;;  %s61_s30 = sshll.u32 %s2556_s29, 4  ;;  %s50_s28 = int_to_ptr.vmem [resolvable:$true] %s49_s28  ;;  %s2636_s30 = int_to_ptr.vmem [resolvable:$true] %s61_s30 }
  0x26   :  { %s2477_s10 = scalar_lea.hbm %s2921_s4, 1024 }
  0x27   :  { %p2478_p2 = scmp.ne.s32.totalorder %s2921_s4, %s2477_s10  ;;  %p2481_p3 = scmp.lt.u32.totalorder %s2477_s10, %s2921_s4 }
  0x29   :  { %p2483_p4 = pnand %p2481_p3, %p2478_p2 }
  0x2b   :  { %2486 = shalt.err (!%p2483_p4)
}
  0x2c   :  { %s2487_s1 = scalar_lea.vmem %s50_s28, 1024  ;;  %p2492_p6 = scmp.lt.s32.totalorder %s50_s28, %s50_s28 }
  0x2d   :  { %p2488_p5 = scmp.ne.s32.totalorder %s50_s28, %s2487_s1  ;;  %p2493_p7 = scmp.lt.s32.totalorder %s2487_s1, %s2487_s1 }
  0x2f   :  { %p2494_p8 = por %p2493_p7, %p2492_p6 }
  0x31   :  { %p2495_p9 = pnand %p2494_p8, %p2488_p5 }
  0x33   :  { %2498 = shalt.err (!%p2495_p9)
}
  0x34   :  { %55 = dma.hbm_to_vmem [thread:$0]  %s2921_s4, 1024, %s50_s28, [#allocation7], %s2553_s13, %s2553_s13, %s2554_s14  }
  0x35   :  { %s2499_s20 = scalar_lea.hbm %s2922_s5, 1024 }
  0x36   :  { %p2500_p10 = scmp.ne.s32.totalorder %s2922_s5, %s2499_s20  ;;  %p2503_p11 = scmp.lt.u32.totalorder %s2499_s20, %s2922_s5 }
  0x38   :  { %p2505_p12 = pnand %p2503_p11, %p2500_p10 }
  0x3a   :  { %2508 = shalt.err (!%p2505_p12)
}
  0x3b   :  { %s2509_s2 = scalar_lea.vmem %s2636_s30, 1024  ;;  %p2514_p0 = scmp.lt.s32.totalorder %s2636_s30, %s2636_s30 }
  0x3c   :  { %p2510_p13 = scmp.ne.s32.totalorder %s2636_s30, %s2509_s2  ;;  %p2515_p1 = scmp.lt.s32.totalorder %s2509_s2, %s2509_s2 }
  0x3e   :  { %p2516_p2 = por %p2515_p1, %p2514_p0 }
  0x40   :  { %p2517_p3 = pnand %p2516_p2, %p2510_p13 }
  0x42   :  { %2520 = shalt.err (!%p2517_p3)
}
  0x43   :  { %67 = dma.hbm_to_vmem [thread:$0]  %s2922_s5, 1024, %s2636_s30, [#allocation10], %s2553_s13, %s2553_s13, %s2554_s14  }
  0x44   :  { %2543 = dma.done.wait [#allocation4], 2048  }
  0x45   :  { %2544 = vsyncadd [#allocation4], 4294965248 }
  0x46   :  { %2545 = dma.done.wait [#allocation7], 3072  }
  0x47   :  { %2546 = vsyncadd [#allocation7], 4294964224 }
  0x48   :  { %2547 = dma.done.wait [#allocation10], 1024  }
  0x49   :  { %2548 = vsyncadd [#allocation10], 4294966272  ;;  %v2557_v0 = vmov 0   ;;  %v2337_v1 = vld [vmem:[#allocation3 + $0x40] sm:$0xff]   ;;  %v2339_v3 = vld [vmem:[#allocation3 + $0x48] sm:$0xff]  }
  0x4a   :  { %2335 = vset.pattern.permute.xlu0 %v2557_v0  ;;  %2336 = vset.pattern.permute.xlu1 %v2557_v0  ;;  %v2338_v2 = vld [vmem:[#allocation3] sm:$0xff]   ;;  %v2340_v4 = vld [vmem:[#allocation3 + $0x8] sm:$0xff]   ;;  %v2341_v5 = vld [vmem:[#allocation3 + $0x50] sm:$0xff]  }
  0x4b   :  { %2039 = vmatprep.subr.bf16.mxu0 %v2337_v1  ;;  %v2342_v6 = vld [vmem:[#allocation3 + $0x10] sm:$0xff]   ;;  %v2343_v7 = vld [vmem:[#allocation3 + $0x58] sm:$0xff]   ;;  %v2345_v9 = vld [vmem:[#allocation3 + $0x60] sm:$0xff]  }
  0x4c   :  { %2040 = vmatpush3.bf16.msra.mxu0 %v2338_v2  ;;  %v2344_v8 = vld [vmem:[#allocation3 + $0x18] sm:$0xff]   ;;  %v2346_v10 = vld [vmem:[#allocation3 + $0x20] sm:$0xff]   ;;  %v2347_v11 = vld [vmem:[#allocation3 + $0x68] sm:$0xff]  }
  0x4d   :  { %2041 = vmatprep.subr.bf16.mxu0 %v2339_v3  ;;  %v2355_v12 = vld [vmem:[%s2917_s0 + $0x4] ss:$8 sps:$4 sm:$0xff]   ;;  %v2349_v14 = vld [vmem:[#allocation3 + $0x70] sm:$0xff]   ;;  %v2351_v16 = vld [vmem:[#allocation3 + $0x78] sm:$0xff]  }
  0x4e   :  { %v2348_v13 = vld [vmem:[#allocation3 + $0x28] sm:$0xff]   ;;  %503 = vmatprep.mubr.bf16.mxu0 %v2355_v12  ;;  %v2350_v15 = vld [vmem:[#allocation3 + $0x30] sm:$0xff]   ;;  %v2352_v17 = vld [vmem:[#allocation3 + $0x38] sm:$0xff]  }
  0x4f   :  { %v2353_v18 = vld [vmem:[%s2917_s0] ss:$8 sps:$4 sm:$0xff]   ;;  %v2356_v20 = vld [vmem:[%s2917_s0 + $0x14] ss:$8 sps:$4 sm:$0xff]   ;;  %v2358_v25 = vld [vmem:[%s2917_s0 + $0x10] ss:$8 sps:$4 sm:$0xff]  }
  0x50   :  { %2042 = vmatpush3.bf16.msra.mxu0 %v2340_v4  ;;  %v731_v19 = vld [vmem:[%s2920_s3] sm:$0xff]  ;;  %v733_v21 = vld [vmem:[%s2920_s3 + $0x10] sm:$0xff]  ;;  %v732_v22 = vld [vmem:[%s2920_s3 + $0x8] sm:$0xff] }
  0x51   :  { %2043 = vmatprep.subr.bf16.mxu0 %v2341_v5  ;;  %765 = vperm.xlu0 %2335, %v731_v19   ;;  %v734_v23 = vld [vmem:[%s2920_s3 + $0x18] sm:$0xff]  ;;  %v735_v24 = vld [vmem:[%s2920_s3 + $0x20] sm:$0xff]  ;;  %v736_v26 = vld [vmem:[%s2920_s3 + $0x28] sm:$0xff] }
  0x52   :  { %775 = vperm.xlu1 %2336, %v733_v21   ;;  %v2359_v27 = vld [vmem:[%s2917_s0 + $0x24] ss:$8 sps:$4 sm:$0xff]   ;;  %v737_v28 = vld [vmem:[%s2920_s3 + $0x30] sm:$0xff]  ;;  %v738_v29 = vld [vmem:[%s2920_s3 + $0x38] sm:$0xff] }
  0x53   :  { %v739_v30 = vld [vmem:[%s2920_s3 + $0x40] sm:$0xff]  ;;  %v740_v33 = vld [vmem:[%s2920_s3 + $0x48] sm:$0xff]  ;;  %v2362_v34 = vld [vmem:[%s2917_s0 + $0x34] ss:$8 sps:$4 sm:$0xff]  }
  0x54   :  { %2044 = vmatpush3.bf16.msra.mxu0 %v2342_v6  ;;  %v2361_v31 = vld [vmem:[%s2917_s0 + $0x20] ss:$8 sps:$4 sm:$0xff]   ;;  %v741_v36 = vld [vmem:[%s2920_s3 + $0x50] sm:$0xff]  ;;  %v742_v38 = vld [vmem:[%s2920_s3 + $0x58] sm:$0xff] }
  0x55   :  { %2045 = vmatprep.subr.bf16.mxu0 %v2343_v7  ;;  %770 = vperm.xlu0 %2335, %v732_v22   ;;  %v2401_v32 = vld [vmem:[#allocation9] sm:$0xff]   ;;  %v2402_v35 = vld [vmem:[#allocation9 + $0x8] sm:$0xff]   ;;  %v2403_v37 = vld [vmem:[#allocation9 + $0x10] sm:$0xff]  }
  0x56   :  { %780 = vperm.xlu1 %2336, %v734_v23   ;;  %2199 = vmatprep.subr.bf16.mxu1 %v2401_v32  ;;  %v2364_v39 = vld [vmem:[%s2917_s0 + $0x30] ss:$8 sps:$4 sm:$0xff]   ;;  %v743_v40 = vld [vmem:[%s2920_s3 + $0x60] sm:$0xff]  ;;  %v744_v43 = vld [vmem:[%s2920_s3 + $0x68] sm:$0xff] }
  0x57   :  { %2200 = vmatpush3.bf16.msra.mxu1 %v2401_v32  ;;  %v2365_v41 = vld [vmem:[%s2917_s0 + $0x44] ss:$8 sps:$4 sm:$0xff]   ;;  %v2404_v42 = vld [vmem:[#allocation9 + $0x18] sm:$0xff]   ;;  %v745_v44 = vld [vmem:[%s2920_s3 + $0x70] sm:$0xff] }
  0x58   :  { %2046 = vmatpush3.bf16.msra.mxu0 %v2344_v8  ;;  %2201 = vmatprep.subr.bf16.mxu1 %v2402_v35  ;;  %v2409_v45 = vld [vmem:[#allocation6] sm:$0xff]   ;;  %v746_v47 = vld [vmem:[%s2920_s3 + $0x78] sm:$0xff]  ;;  %v2406_v50 = vld [vmem:[#allocation9 + $0x28] sm:$0xff]  }
  0x59   :  { %2047 = vmatprep.subr.bf16.mxu0 %v2345_v9  ;;  %785 = vperm.xlu0 %2335, %v735_v24   ;;  %v2405_v46 = vld [vmem:[#allocation9 + $0x20] sm:$0xff]   ;;  %v748_v51 = vld [vmem:[%s2920_s3 + $0x88] sm:$0xff]  ;;  %v2368_v52 = vld [vmem:[%s2917_s0 + $0x54] ss:$8 sps:$4 sm:$0xff]  }
  0x5a   :  { %790 = vperm.xlu1 %2336, %v736_v26   ;;  %2215 = vmatprep.mubr.bf16.mxu1 %v2409_v45  ;;  %v2367_v48 = vld [vmem:[%s2917_s0 + $0x40] ss:$8 sps:$4 sm:$0xff]   ;;  %v749_v53 = vld [vmem:[%s2920_s3 + $0x90] sm:$0xff]  ;;  %v750_v55 = vld [vmem:[%s2920_s3 + $0x98] sm:$0xff] }
  0x5b   :  { %2202 = vmatpush3.bf16.msra.mxu1 %v2402_v35  ;;  %v747_v49 = vld [vmem:[%s2920_s3 + $0x80] sm:$0xff]  ;;  %v2407_v54 = vld [vmem:[#allocation9 + $0x30] sm:$0xff]   ;;  %v752_v58 = vld [vmem:[%s2920_s3 + $0xa8] sm:$0xff] }
  0x5c   :  { %2048 = vmatpush3.bf16.msra.mxu0 %v2346_v10  ;;  %2203 = vmatprep.subr.bf16.mxu1 %v2403_v37  ;;  %v751_v56 = vld [vmem:[%s2920_s3 + $0xa0] sm:$0xff]  ;;  %v2370_v57 = vld [vmem:[%s2917_s0 + $0x50] ss:$8 sps:$4 sm:$0xff]   ;;  %v2410_v0 = vld [vmem:[#allocation6 + $0x8] sm:$0xff]  }
  0x5d   :  { %2049 = vmatprep.subr.bf16.mxu0 %v2347_v11  ;;  %795 = vperm.xlu0 %2335, %v737_v28   ;;  %v2371_v59 = vld [vmem:[%s2917_s0 + $0x64] ss:$8 sps:$4 sm:$0xff]   ;;  %v2408_v60 = vld [vmem:[#allocation9 + $0x38] sm:$0xff]   ;;  %v753_v61 = vld [vmem:[%s2920_s3 + $0xb0] sm:$0xff] }
  0x5e   :  { %800 = vperm.xlu1 %2336, %v738_v29   ;;  %v2419_v62 = vld [vmem:[#allocation8] sm:$0xff]   ;;  %v754_v63 = vld [vmem:[%s2920_s3 + $0xb8] sm:$0xff]  ;;  %v2411_v2 = vld [vmem:[#allocation6 + $0x10] sm:$0xff]  }
  0x5f   :  { %2204 = vmatpush3.bf16.msra.mxu1 %v2403_v37  ;;  %v755_v1 = vld [vmem:[%s2920_s3 + $0xc0] sm:$0xff]  ;;  %v2420_v3 = vld [vmem:[#allocation8 + $0x8] sm:$0xff]   ;;  %v2374_v6 = vld [vmem:[%s2917_s0 + $0x74] ss:$8 sps:$4 sm:$0xff]  }
  0x60   :  { %2050 = vmatpush3.bf16.msra.mxu0 %v2348_v13  ;;  %2205 = vmatprep.subr.bf16.mxu1 %v2404_v42  ;;  %v2373_v4 = vld [vmem:[%s2917_s0 + $0x60] ss:$8 sps:$4 sm:$0xff]   ;;  %v757_v7 = vld [vmem:[%s2920_s3 + $0xd0] sm:$0xff]  ;;  %v758_v9 = vld [vmem:[%s2920_s3 + $0xd8] sm:$0xff] }
  0x61   :  { %2051 = vmatprep.subr.bf16.mxu0 %v2349_v14  ;;  %805 = vperm.xlu0 %2335, %v739_v30   ;;  %v756_v5 = vld [vmem:[%s2920_s3 + $0xc8] sm:$0xff]  ;;  %v2423_v8 = vld [vmem:[#allocation8 + $0x10] sm:$0xff]   ;;  %v2412_v10 = vld [vmem:[#allocation6 + $0x18] sm:$0xff]  }
  0x62   :  { %810 = vperm.xlu1 %2336, %v740_v33   ;;  %v759_v11 = vld [vmem:[%s2920_s3 + $0xe0] sm:$0xff]  ;;  %v2424_v13 = vld [vmem:[#allocation8 + $0x18] sm:$0xff]   ;;  %v2414_v19 = vld [vmem:[#allocation6 + $0x28] sm:$0xff]  }
  0x63   :  { %2206 = vmatpush3.bf16.msra.mxu1 %v2404_v42  ;;  %v2413_v12 = vld [vmem:[#allocation6 + $0x20] sm:$0xff]   ;;  %v2376_v14 = vld [vmem:[%s2917_s0 + $0x70] ss:$8 sps:$4 sm:$0xff]   ;;  %v2380_v22 = vld [vmem:[%s2917_s0 + $0x94] ss:$8 sps:$4 sm:$0xff]  }
  0x64   :  { %2052 = vmatpush3.bf16.msra.mxu0 %v2350_v15  ;;  %2207 = vmatprep.subr.bf16.mxu1 %v2405_v46  ;;  %v760_v15 = vld [vmem:[%s2920_s3 + $0xe8] sm:$0xff]  ;;  %v2416_v23 = vld [vmem:[#allocation6 + $0x38] sm:$0xff]   ;;  %v2417_v24 = vld [vmem:[#allocation6 + $0x40] sm:$0xff]  }
  0x65   :  { %2053 = vmatprep.subr.bf16.mxu0 %v2351_v16  ;;  %815 = vperm.xlu0 %2335, %v741_v36   ;;  %v2377_v16 = vld [vmem:[%s2917_s0 + $0x84] ss:$8 sps:$4 sm:$0xff]   ;;  %v2379_v21 = vld [vmem:[%s2917_s0 + $0x80] ss:$8 sps:$4 sm:$0xff]   ;;  %v2421_v28 = vld [vmem:[#allocation6 + $0x50] sm:$0xff]  }
  0x66   :  { %820 = vperm.xlu1 %2336, %v742_v38   ;;  %v2383_v26 = vld [vmem:[%s2917_s0 + $0xa4] ss:$8 sps:$4 sm:$0xff]   ;;  %v2385_v29 = vld [vmem:[%s2917_s0 + $0xa0] ss:$8 sps:$4 sm:$0xff]   ;;  %v2386_v30 = vld [vmem:[%s2917_s0 + $0xb4] ss:$8 sps:$4 sm:$0xff]  }
  0x67   :  { %2208 = vmatpush3.bf16.msra.mxu1 %v2405_v46  ;;  %v2425_v32 = vld [vmem:[#allocation6 + $0x60] sm:$0xff]   ;;  %v2428_v36 = vld [vmem:[#allocation8 + $0x28] sm:$0xff]   ;;  %v2429_v38 = vld [vmem:[#allocation6 + $0x70] sm:$0xff]  }
  0x68   :  { %2054 = vmatpush3.bf16.msra.mxu0 %v2352_v17  ;;  %2209 = vmatprep.subr.bf16.mxu1 %v2406_v50  ;;  %v761_v17 = vld [vmem:[%s2920_s3 + $0xf0] sm:$0xff]  ;;  %v2427_v33 = vld [vmem:[#allocation8 + $0x20] sm:$0xff]   ;;  %v2426_v37 = vld [vmem:[#allocation6 + $0x68] sm:$0xff]  }
  0x69   :  { %825 = vperm.xlu0 %2335, %v743_v40   ;;  %v2389_v35 = vld [vmem:[%s2917_s0 + $0xc4] ss:$8 sps:$4 sm:$0xff]   ;;  %v2391_v40 = vld [vmem:[%s2917_s0 + $0xc0] ss:$8 sps:$4 sm:$0xff]   ;;  %v2432_v42 = vld [vmem:[#allocation8 + $0x38] sm:$0xff]  }
  0x6a   :  { %830 = vperm.xlu1 %2336, %v744_v43   ;;  %v2430_v43 = vld [vmem:[#allocation6 + $0x78] sm:$0xff]   ;;  %v2395_v45 = vld [vmem:[%s2917_s0 + $0xe4] ss:$8 sps:$4 sm:$0xff]   ;;  %v2397_v46 = vld [vmem:[%s2917_s0 + $0xe0] ss:$8 sps:$4 sm:$0xff]  }
  0x6b   :  { %504 = vmatmul.mubr.bf16.vlgmr.msra.gmra.mrb[0].mxu0 %v2353_v18  ;;  %2210 = vmatpush3.bf16.msra.mxu1 %v2406_v50  ;;  %v762_v18 = vld [vmem:[%s2920_s3 + $0xf8] sm:$0xff] }
  0x6c   :  { %511 = vmatprep.mubr.bf16.mxu0 %v2356_v20  ;;  %2211 = vmatprep.subr.bf16.mxu1 %v2407_v54  ;;  %v2415_v20 = vld [vmem:[#allocation6 + $0x30] sm:$0xff]  }
  0x6d   :  { %835 = vperm.xlu0 %2335, %v745_v44   ;;  %v2394_v44 = vld [vmem:[%s2917_s0 + $0xd0] ss:$8 sps:$4 sm:$0xff]  }
  0x6e   :  { %840 = vperm.xlu1 %2336, %v746_v47   ;;  %v2398_v47 = vld [vmem:[%s2917_s0 + $0xf4] ss:$8 sps:$4 sm:$0xff]  }
  0x6f   :  { %2212 = vmatpush3.bf16.msra.mxu1 %v2407_v54 }
  0x70   :  { %2213 = vmatprep.subr.bf16.mxu1 %v2408_v60 }
  0x71   :  { %845 = vperm.xlu0 %2335, %v747_v49  }
  0x72   :  { %850 = vperm.xlu1 %2336, %v748_v51  }
  0x73   :  { %512 = vmatmul.mubr.bf16.gmra.mrb[4].mxu0 %v2358_v25  ;;  %2214 = vmatpush3.bf16.msra.mxu1 %v2408_v60  ;;  %v2382_v25 = vld [vmem:[%s2917_s0 + $0x90] ss:$8 sps:$4 sm:$0xff]  }
  0x74   :  { %519 = vmatprep.mubr.bf16.mxu0 %v2359_v27  ;;  %2247 = vmatprep.subr.bf16.mxu1 %v2419_v62  ;;  %v2418_v27 = vld [vmem:[#allocation6 + $0x48] sm:$0xff]  }
  0x75   :  { %855 = vperm.xlu0 %2335, %v749_v53  }
  0x76   :  { %860 = vperm.xlu1 %2336, %v750_v55   ;;  %2216 = vmatmul.mubr.bf16.vlgmr.msra.gmra.mrb[0].mxu1 %v2410_v0 }
  0x77   :  { %2219 = vmatprep.mubr.bf16.mxu1 %v2411_v2  ;;  %2248 = vmatpush3.bf16.msra.mxu1 %v2419_v62 }
  0x78   :  { %2249 = vmatprep.subr.bf16.mxu1 %v2420_v3 }
  0x79   :  { %865 = vperm.xlu0 %2335, %v751_v56  }
  0x7a   :  { %870 = vperm.xlu1 %2336, %v752_v58  }
  0x7b   :  { %520 = vmatmul.mubr.bf16.gmra.mrb[8].mxu0 %v2361_v31  ;;  %2250 = vmatpush3.bf16.msra.mxu1 %v2420_v3  ;;  %v2422_v31 = vld [vmem:[#allocation6 + $0x58] sm:$0xff]  }
  0x7c   :  { %527 = vmatprep.mubr.bf16.mxu0 %v2362_v34  ;;  %2251 = vmatprep.subr.bf16.mxu1 %v2423_v8  ;;  %v2388_v34 = vld [vmem:[%s2917_s0 + $0xb0] ss:$8 sps:$4 sm:$0xff]  }
  0x7d   :  { %875 = vperm.xlu0 %2335, %v753_v61  }
  0x7e   :  { %880 = vperm.xlu1 %2336, %v754_v63   ;;  %2220 = vmatmul.mubr.bf16.gmra.mrb[4].mxu1 %v2412_v10 }
  0x7f   :  { %2223 = vmatprep.mubr.bf16.mxu1 %v2413_v12  ;;  %2252 = vmatpush3.bf16.msra.mxu1 %v2423_v8 }
  0x80   :  { %2253 = vmatprep.subr.bf16.mxu1 %v2424_v13 }
  0x81   :  { %885 = vperm.xlu0 %2335, %v755_v1  }
  0x82   :  { %890 = vperm.xlu1 %2336, %v756_v5  }
  0x83   :  { %528 = vmatmul.mubr.bf16.gmra.mrb[12].mxu0 %v2364_v39  ;;  %2254 = vmatpush3.bf16.msra.mxu1 %v2424_v13  ;;  %v2431_v39 = vld [vmem:[#allocation8 + $0x30] sm:$0xff]  }
  0x84   :  { %535 = vmatprep.mubr.bf16.mxu0 %v2365_v41  ;;  %2255 = vmatprep.subr.bf16.mxu1 %v2427_v33  ;;  %v2392_v41 = vld [vmem:[%s2917_s0 + $0xd4] ss:$8 sps:$4 sm:$0xff]  }
  0x85   :  { %895 = vperm.xlu0 %2335, %v757_v7  }
  0x86   :  { %900 = vperm.xlu1 %2336, %v758_v9   ;;  %2224 = vmatmul.mubr.bf16.gmra.mrb[8].mxu1 %v2414_v19 }
  0x87   :  { %2227 = vmatprep.mubr.bf16.mxu1 %v2415_v20  ;;  %2256 = vmatpush3.bf16.msra.mxu1 %v2427_v33 }
  0x88   :  { %2257 = vmatprep.subr.bf16.mxu1 %v2428_v36 }
  0x89   :  { %905 = vperm.xlu0 %2335, %v759_v11  }
  0x8a   :  { %910 = vperm.xlu1 %2336, %v760_v15  }
  0x8b   :  { %536 = vmatmul.mubr.bf16.gmra.mrb[16].mxu0 %v2367_v48  ;;  %2258 = vmatpush3.bf16.msra.mxu1 %v2428_v36  ;;  %v2400_v48 = vld [vmem:[%s2917_s0 + $0xf0] ss:$8 sps:$4 sm:$0xff]  }
  0x8c   :  { %543 = vmatprep.mubr.bf16.mxu0 %v2368_v52  ;;  %2259 = vmatprep.subr.bf16.mxu1 %v2431_v39 }
  0x8d   :  { %915 = vperm.xlu0 %2335, %v761_v17  }
  0x8e   :  { %920 = vperm.xlu1 %2336, %v762_v18   ;;  %2228 = vmatmul.mubr.bf16.gmra.mrb[12].mxu1 %v2416_v23 }
  0x8f   :  { %2231 = vmatprep.mubr.bf16.mxu1 %v2417_v24  ;;  %2260 = vmatpush3.bf16.msra.mxu1 %v2431_v39 }
  0x90   :  { %2261 = vmatprep.subr.bf16.mxu1 %v2432_v42 }
  0x93   :  { %544 = vmatmul.mubr.bf16.gmra.mrb[20].mxu0 %v2370_v57  ;;  %2262 = vmatpush3.bf16.msra.mxu1 %v2432_v42 }
  0x94   :  { %551 = vmatprep.mubr.bf16.mxu0 %v2371_v59 }
  0x96   :  { %2232 = vmatmul.mubr.bf16.gmra.mrb[16].mxu1 %v2418_v27 }
  0x97   :  { %2235 = vmatprep.mubr.bf16.mxu1 %v2421_v28 }
  0x9b   :  { %552 = vmatmul.mubr.bf16.gmra.mrb[24].mxu0 %v2373_v4 }
  0x9c   :  { %559 = vmatprep.mubr.bf16.mxu0 %v2374_v6 }
  0x9e   :  { %2236 = vmatmul.mubr.bf16.gmra.mrb[20].mxu1 %v2422_v31 }
  0x9f   :  { %2239 = vmatprep.mubr.bf16.mxu1 %v2425_v32 }
  0xa3   :  { %560 = vmatmul.mubr.bf16.gmra.mrb[28].mxu0 %v2376_v14 }
  0xa4   :  { %567 = vmatprep.mubr.bf16.mxu0 %v2377_v16 }
  0xa6   :  { %2240 = vmatmul.mubr.bf16.gmra.mrb[24].mxu1 %v2426_v37 }
  0xa7   :  { %2243 = vmatprep.mubr.bf16.mxu1 %v2429_v38 }
  0xab   :  { %568 = vmatmul.mubr.bf16.gmra.mrb[32].mxu0 %v2379_v21 }
  0xac   :  { %575 = vmatprep.mubr.bf16.mxu0 %v2380_v22 }
  0xae   :  { %2244 = vmatmul.mubr.bf16.gmra.mrb[28].mxu1 %v2430_v43 }
  0xb3   :  { %576 = vmatmul.mubr.bf16.gmra.mrb[36].mxu0 %v2382_v25 }
  0xb4   :  { %583 = vmatprep.mubr.bf16.mxu0 %v2383_v26 }
  0xbb   :  { %584 = vmatmul.mubr.bf16.gmra.mrb[40].mxu0 %v2385_v29 }
  0xbc   :  { %591 = vmatprep.mubr.bf16.mxu0 %v2386_v30 }
  0xc3   :  { %592 = vmatmul.mubr.bf16.gmra.mrb[44].mxu0 %v2388_v34 }
  0xc4   :  { %599 = vmatprep.mubr.bf16.mxu0 %v2389_v35 }
  0xcb   :  { %600 = vmatmul.mubr.bf16.gmra.mrb[48].mxu0 %v2391_v40 }
  0xcc   :  { %607 = vmatprep.mubr.bf16.mxu0 %v2392_v41 }
  0xd0   :  { %v766_v49 = vpop.permute.xlu0 %765 }
  0xd1   :  { %v776_v59 = vpop.permute.xlu1 %775 }
  0xd3   :  { %608 = vmatmul.mubr.bf16.gmra.mrb[52].mxu0 %v2394_v44 }
  0xd4   :  { %615 = vmatprep.mubr.bf16.mxu0 %v2395_v45  ;;  %v771_v55 = vpop.permute.xlu0 %770 }
  0xd5   :  { %v781_v3 = vpop.permute.xlu1 %780 }
  0xd8   :  { %v786_v13 = vpop.permute.xlu0 %785 }
  0xd9   :  { %v791_v14 = vpop.permute.xlu1 %790 }
  0xdb   :  { %616 = vmatmul.mubr.bf16.gmra.mrb[56].mxu0 %v2397_v46 }
  0xdc   :  { %623 = vmatprep.mubr.bf16.mxu0 %v2398_v47  ;;  %v796_v24 = vpop.permute.xlu0 %795 }
  0xdd   :  { %v801_v25 = vpop.permute.xlu1 %800 }
  0xe0   :  { %v806_v35 = vpop.permute.xlu0 %805 }
  0xe1   :  { %v811_v36 = vpop.permute.xlu1 %810 }
  0xe3   :  { %624 = vmatmul.mubr.bf16.gmra.mrb[60].mxu0 %v2400_v48 }
  0xe4   :  { %v816_v46 = vpop.permute.xlu0 %815 }
  0xe5   :  { %v821_v47 = vpop.permute.xlu1 %820 }
 0x13e   :  { %v2055_v50 = vpop.f32.mrb[0].mxu0 }
 0x13f   :  { %v2056_v51 = vpop.f32.mrb[1].mxu0 }
 0x140   :  { %v2057_v52 = vadd.f32 %v2056_v51, %v2055_v50  ;;  %v2058_v53 = vpop.f32.mrb[2].mxu0 }
 0x141   :  { %v2059_v54 = vpop.f32.mrb[3].mxu0 }
 0x142   :  { %v2060_v56 = vadd.f32 %v2059_v54, %v2058_v53  ;;  %v923_v57 = vmul.f32 %v2057_v52, %v766_v49 }
 0x144   :  { %v924_v58 = vmul.f32 %v2060_v56, %v771_v55 }
 0x146   :  { %v955_v60 = vpack.c.bf16 %v924_v58, %v923_v57  ;;  %v2061_v61 = vpop.f32.mrb[4].mxu0  ;;  %v826_v57 = vpop.permute.xlu0 %825 }
 0x147   :  { %v2062_v62 = vpop.f32.mrb[5].mxu0  ;;  %v831_v58 = vpop.permute.xlu1 %830 }
 0x148   :  { %v2063_v63 = vadd.f32 %v2062_v62, %v2061_v61  ;;  %v2064_v0 = vpop.f32.mrb[6].mxu0  ;;  %2263 = vmatprep.mubr.bf16.mxu1 %v955_v60 }
 0x149   :  { %v2065_v1 = vpop.f32.mrb[7].mxu0 }
 0x14a   :  { %v2066_v2 = vadd.f32 %v2065_v1, %v2064_v0  ;;  %v925_v4 = vmul.f32 %v2063_v63, %v776_v59 }
 0x14c   :  { %v926_v5 = vmul.f32 %v2066_v2, %v781_v3 }
 0x14e   :  { %v956_v6 = vpack.c.bf16 %v926_v5, %v925_v4  ;;  %v2067_v7 = vpop.f32.mrb[8].mxu0  ;;  %v836_v4 = vpop.permute.xlu0 %835 }
 0x14f   :  { %v2068_v8 = vpop.f32.mrb[9].mxu0  ;;  %v841_v5 = vpop.permute.xlu1 %840 }
 0x150   :  { %v2069_v9 = vadd.f32 %v2068_v8, %v2067_v7  ;;  %v2070_v10 = vpop.f32.mrb[10].mxu0  ;;  %2264 = vmatmul.mubr.bf16.vlgmr.msra.gmra.mrb[0].mxu1 %v956_v6 }
 0x151   :  { %v2071_v11 = vpop.f32.mrb[11].mxu0 }
 0x152   :  { %v2072_v12 = vadd.f32 %v2071_v11, %v2070_v10  ;;  %v927_v15 = vmul.f32 %v2069_v9, %v786_v13 }
 0x154   :  { %v928_v16 = vmul.f32 %v2072_v12, %v791_v14 }
 0x156   :  { %v2073_v17 = vpop.f32.mrb[12].mxu0  ;;  %v957_v18 = vpack.c.bf16 %v928_v16, %v927_v15  ;;  %v846_v15 = vpop.permute.xlu0 %845 }
 0x157   :  { %v2074_v19 = vpop.f32.mrb[13].mxu0  ;;  %v851_v16 = vpop.permute.xlu1 %850 }
 0x158   :  { %v2075_v20 = vadd.f32 %v2074_v19, %v2073_v17  ;;  %v2076_v21 = vpop.f32.mrb[14].mxu0  ;;  %2267 = vmatprep.mubr.bf16.mxu1 %v957_v18 }
 0x159   :  { %v2077_v22 = vpop.f32.mrb[15].mxu0 }
 0x15a   :  { %v2078_v23 = vadd.f32 %v2077_v22, %v2076_v21  ;;  %v929_v26 = vmul.f32 %v2075_v20, %v796_v24 }
 0x15c   :  { %v930_v27 = vmul.f32 %v2078_v23, %v801_v25 }
 0x15e   :  { %v2079_v28 = vpop.f32.mrb[16].mxu0  ;;  %v958_v29 = vpack.c.bf16 %v930_v27, %v929_v26  ;;  %v856_v26 = vpop.permute.xlu0 %855 }
 0x15f   :  { %v2080_v30 = vpop.f32.mrb[17].mxu0  ;;  %v861_v27 = vpop.permute.xlu1 %860 }
 0x160   :  { %v2081_v31 = vadd.f32 %v2080_v30, %v2079_v28  ;;  %v2082_v32 = vpop.f32.mrb[18].mxu0  ;;  %2268 = vmatmul.mubr.bf16.gmra.mrb[4].mxu1 %v958_v29 }
 0x161   :  { %v2083_v33 = vpop.f32.mrb[19].mxu0 }
 0x162   :  { %v2084_v34 = vadd.f32 %v2083_v33, %v2082_v32  ;;  %v931_v37 = vmul.f32 %v2081_v31, %v806_v35 }
 0x164   :  { %v932_v38 = vmul.f32 %v2084_v34, %v811_v36 }
 0x166   :  { %v2085_v39 = vpop.f32.mrb[20].mxu0  ;;  %v959_v40 = vpack.c.bf16 %v932_v38, %v931_v37  ;;  %v866_v37 = vpop.permute.xlu0 %865 }
 0x167   :  { %v2086_v41 = vpop.f32.mrb[21].mxu0  ;;  %v871_v38 = vpop.permute.xlu1 %870 }
 0x168   :  { %v2087_v42 = vadd.f32 %v2086_v41, %v2085_v39  ;;  %v2088_v43 = vpop.f32.mrb[22].mxu0  ;;  %2271 = vmatprep.mubr.bf16.mxu1 %v959_v40 }
 0x169   :  { %v2089_v44 = vpop.f32.mrb[23].mxu0 }
 0x16a   :  { %v2090_v45 = vadd.f32 %v2089_v44, %v2088_v43  ;;  %v933_v48 = vmul.f32 %v2087_v42, %v816_v46 }
 0x16c   :  { %v934_v49 = vmul.f32 %v2090_v45, %v821_v47 }
 0x16e   :  { %v2091_v50 = vpop.f32.mrb[24].mxu0  ;;  %v960_v51 = vpack.c.bf16 %v934_v49, %v933_v48  ;;  %v876_v48 = vpop.permute.xlu0 %875 }
 0x16f   :  { %v2092_v52 = vpop.f32.mrb[25].mxu0  ;;  %v881_v49 = vpop.permute.xlu1 %880 }
 0x170   :  { %v2093_v53 = vadd.f32 %v2092_v52, %v2091_v50  ;;  %v2094_v54 = vpop.f32.mrb[26].mxu0  ;;  %2272 = vmatmul.mubr.bf16.gmra.mrb[8].mxu1 %v960_v51 }
 0x171   :  { %v2095_v55 = vpop.f32.mrb[27].mxu0 }
 0x172   :  { %v2096_v56 = vadd.f32 %v2095_v55, %v2094_v54  ;;  %v935_v59 = vmul.f32 %v2093_v53, %v826_v57 }
 0x174   :  { %v936_v60 = vmul.f32 %v2096_v56, %v831_v58 }
 0x176   :  { %v2097_v61 = vpop.f32.mrb[28].mxu0  ;;  %v961_v62 = vpack.c.bf16 %v936_v60, %v935_v59  ;;  %v886_v59 = vpop.permute.xlu0 %885 }
 0x177   :  { %v2098_v63 = vpop.f32.mrb[29].mxu0  ;;  %v891_v60 = vpop.permute.xlu1 %890 }
 0x178   :  { %v2099_v0 = vadd.f32 %v2098_v63, %v2097_v61  ;;  %v2100_v1 = vpop.f32.mrb[30].mxu0  ;;  %2275 = vmatprep.mubr.bf16.mxu1 %v961_v62 }
 0x179   :  { %v2101_v2 = vpop.f32.mrb[31].mxu0 }
 0x17a   :  { %v2102_v3 = vadd.f32 %v2101_v2, %v2100_v1  ;;  %v937_v6 = vmul.f32 %v2099_v0, %v836_v4 }
 0x17c   :  { %v938_v7 = vmul.f32 %v2102_v3, %v841_v5 }
 0x17e   :  { %v2103_v8 = vpop.f32.mrb[32].mxu0  ;;  %v962_v9 = vpack.c.bf16 %v938_v7, %v937_v6  ;;  %v896_v6 = vpop.permute.xlu0 %895 }
 0x17f   :  { %v2104_v10 = vpop.f32.mrb[33].mxu0  ;;  %v901_v7 = vpop.permute.xlu1 %900 }
 0x180   :  { %v2105_v11 = vadd.f32 %v2104_v10, %v2103_v8  ;;  %v2106_v12 = vpop.f32.mrb[34].mxu0  ;;  %2276 = vmatmul.mubr.bf16.gmra.mrb[12].mxu1 %v962_v9 }
 0x181   :  { %v2107_v13 = vpop.f32.mrb[35].mxu0 }
 0x182   :  { %v2108_v14 = vadd.f32 %v2107_v13, %v2106_v12  ;;  %v939_v17 = vmul.f32 %v2105_v11, %v846_v15 }
 0x184   :  { %v940_v18 = vmul.f32 %v2108_v14, %v851_v16 }
 0x186   :  { %v2109_v19 = vpop.f32.mrb[36].mxu0  ;;  %v963_v20 = vpack.c.bf16 %v940_v18, %v939_v17  ;;  %v906_v17 = vpop.permute.xlu0 %905 }
 0x187   :  { %v2110_v21 = vpop.f32.mrb[37].mxu0  ;;  %v911_v18 = vpop.permute.xlu1 %910 }
 0x188   :  { %v2111_v22 = vadd.f32 %v2110_v21, %v2109_v19  ;;  %v2112_v23 = vpop.f32.mrb[38].mxu0  ;;  %2279 = vmatprep.mubr.bf16.mxu1 %v963_v20 }
 0x189   :  { %v2113_v24 = vpop.f32.mrb[39].mxu0 }
 0x18a   :  { %v2114_v25 = vadd.f32 %v2113_v24, %v2112_v23  ;;  %v941_v28 = vmul.f32 %v2111_v22, %v856_v26 }
 0x18c   :  { %v942_v29 = vmul.f32 %v2114_v25, %v861_v27 }
 0x18e   :  { %v2115_v30 = vpop.f32.mrb[40].mxu0  ;;  %v964_v31 = vpack.c.bf16 %v942_v29, %v941_v28  ;;  %v916_v28 = vpop.permute.xlu0 %915 }
 0x18f   :  { %v2116_v32 = vpop.f32.mrb[41].mxu0  ;;  %v921_v29 = vpop.permute.xlu1 %920 }
 0x190   :  { %v2117_v33 = vadd.f32 %v2116_v32, %v2115_v30  ;;  %v2118_v34 = vpop.f32.mrb[42].mxu0  ;;  %2280 = vmatmul.mubr.bf16.gmra.mrb[16].mxu1 %v964_v31 }
 0x191   :  { %v2119_v35 = vpop.f32.mrb[43].mxu0 }
 0x192   :  { %v2120_v36 = vadd.f32 %v2119_v35, %v2118_v34  ;;  %v943_v39 = vmul.f32 %v2117_v33, %v866_v37  ;;  %v2868_v33 = vld [vmem:[%s2923_s6] ss:$0 sm:$0xff]  ;;  %s2558_s6 = smov [#allocation11]  }
 0x193   :  { %s1785_s28 = sshll.u32 %s2558_s6, 4  ;;  %s1786_s28 = int_to_ptr.vmem [resolvable:$true] %s1785_s28 }
 0x194   :  { %v944_v40 = vmul.f32 %v2120_v36, %v871_v38  ;;  %s2521_s29 = scalar_lea.vmem %s1786_s28, 2048  ;;  %p2526_p5 = scmp.lt.s32.totalorder %s1786_s28, %s1786_s28 }
 0x195   :  { %p2522_p4 = scmp.ne.s32.totalorder %s1786_s28, %s2521_s29  ;;  %p2527_p6 = scmp.lt.s32.totalorder %s2521_s29, %s2521_s29 }
 0x196   :  { %v2121_v41 = vpop.f32.mrb[44].mxu0  ;;  %v965_v42 = vpack.c.bf16 %v944_v40, %v943_v39 }
 0x197   :  { %v2122_v43 = vpop.f32.mrb[45].mxu0  ;;  %p2528_p7 = por %p2527_p6, %p2526_p5 }
 0x198   :  { %v2123_v44 = vadd.f32 %v2122_v43, %v2121_v41  ;;  %v2124_v45 = vpop.f32.mrb[46].mxu0  ;;  %2283 = vmatprep.mubr.bf16.mxu1 %v965_v42 }
 0x199   :  { %v2125_v46 = vpop.f32.mrb[47].mxu0  ;;  %p2529_p8 = pnand %p2528_p7, %p2522_p4 }
 0x19a   :  { %v2126_v47 = vadd.f32 %v2125_v46, %v2124_v45  ;;  %v945_v50 = vmul.f32 %v2123_v44, %v876_v48 }
 0x19c   :  { %v946_v51 = vmul.f32 %v2126_v47, %v881_v49 }
 0x19e   :  { %v2127_v52 = vpop.f32.mrb[48].mxu0  ;;  %v966_v53 = vpack.c.bf16 %v946_v51, %v945_v50 }
 0x19f   :  { %v2128_v54 = vpop.f32.mrb[49].mxu0 }
 0x1a0   :  { %v2129_v55 = vadd.f32 %v2128_v54, %v2127_v52  ;;  %v2130_v56 = vpop.f32.mrb[50].mxu0  ;;  %2284 = vmatmul.mubr.bf16.gmra.mrb[20].mxu1 %v966_v53 }
 0x1a1   :  { %v2131_v57 = vpop.f32.mrb[51].mxu0 }
 0x1a2   :  { %v2132_v58 = vadd.f32 %v2131_v57, %v2130_v56  ;;  %v947_v61 = vmul.f32 %v2129_v55, %v886_v59 }
 0x1a4   :  { %v948_v62 = vmul.f32 %v2132_v58, %v891_v60 }
 0x1a6   :  { %v2133_v63 = vpop.f32.mrb[52].mxu0  ;;  %v967_v0 = vpack.c.bf16 %v948_v62, %v947_v61 }
 0x1a7   :  { %v2134_v1 = vpop.f32.mrb[53].mxu0 }
 0x1a8   :  { %v2135_v2 = vadd.f32 %v2134_v1, %v2133_v63  ;;  %v2136_v3 = vpop.f32.mrb[54].mxu0  ;;  %2287 = vmatprep.mubr.bf16.mxu1 %v967_v0 }
 0x1a9   :  { %v2137_v4 = vpop.f32.mrb[55].mxu0 }
 0x1aa   :  { %v2138_v5 = vadd.f32 %v2137_v4, %v2136_v3  ;;  %v949_v8 = vmul.f32 %v2135_v2, %v896_v6 }
 0x1ac   :  { %v950_v9 = vmul.f32 %v2138_v5, %v901_v7 }
 0x1ae   :  { %v2139_v10 = vpop.f32.mrb[56].mxu0  ;;  %v968_v11 = vpack.c.bf16 %v950_v9, %v949_v8 }
 0x1af   :  { %v2140_v12 = vpop.f32.mrb[57].mxu0 }
 0x1b0   :  { %v2141_v13 = vadd.f32 %v2140_v12, %v2139_v10  ;;  %v2142_v14 = vpop.f32.mrb[58].mxu0  ;;  %2288 = vmatmul.mubr.bf16.gmra.mrb[24].mxu1 %v968_v11 }
 0x1b1   :  { %v2143_v15 = vpop.f32.mrb[59].mxu0 }
 0x1b2   :  { %v2144_v16 = vadd.f32 %v2143_v15, %v2142_v14  ;;  %v951_v19 = vmul.f32 %v2141_v13, %v906_v17 }
 0x1b4   :  { %v952_v20 = vmul.f32 %v2144_v16, %v911_v18 }
 0x1b6   :  { %v2145_v21 = vpop.f32.mrb[60].mxu0  ;;  %v969_v22 = vpack.c.bf16 %v952_v20, %v951_v19 }
 0x1b7   :  { %v2146_v23 = vpop.f32.mrb[61].mxu0 }
 0x1b8   :  { %v2147_v24 = vadd.f32 %v2146_v23, %v2145_v21  ;;  %v2148_v25 = vpop.f32.mrb[62].mxu0  ;;  %2291 = vmatprep.mubr.bf16.mxu1 %v969_v22 }
 0x1b9   :  { %v2149_v26 = vpop.f32.mrb[63].mxu0 }
 0x1ba   :  { %v2150_v27 = vadd.f32 %v2149_v26, %v2148_v25  ;;  %v953_v30 = vmul.f32 %v2147_v24, %v916_v28 }
 0x1bc   :  { %v954_v31 = vmul.f32 %v2150_v27, %v921_v29 }
 0x1be   :  { %v970_v32 = vpack.c.bf16 %v954_v31, %v953_v30 }
 0x1c0   :  { %2292 = vmatmul.mubr.bf16.gmra.mrb[28].mxu1 %v970_v32 }
 0x223   :  { %v2265_v34 = vpop.f32.mrb[0].mxu1 }
 0x224   :  { %v1558_v35 = vadd.f32 %v2265_v34, %v2868_v33  ;;  %v1422_v36 = vpop.f32.mrb[1].mxu1 }
 0x225   :  { %v1556_v37 = vadd.f32 %v2868_v33, %v1422_v36  ;;  %v2266_v38 = vpop.f32.mrb[2].mxu1 }
 0x226   :  { %v1559_v39 = vadd.f32 %v2266_v38, %v2868_v33  ;;  %v1425_v40 = vpop.f32.mrb[3].mxu1  ;;  %v1590_v42 = vmax.f32 %v1558_v35, 0.0 }
 0x227   :  { %v1557_v41 = vadd.f32 %v2868_v33, %v1425_v40  ;;  %v1588_v44 = vmax.f32 %v1556_v37, 0.0 }
 0x228   :  { %v1591_v43 = vmax.f32 %v1559_v39, 0.0 }
 0x229   :  { %v1589_v45 = vmax.f32 %v1557_v41, 0.0 }
 0x22a   :  { %v1952_v46 = vpack.c.bf16 %v1591_v43, %v1590_v42 }
 0x22b   :  { %v1947_v47 = vpack.c.bf16 %v1589_v45, %v1588_v44 }
 0x22c   :  { %2024 = vst [vmem:[#allocation11 + $0x8] sm:$0xff] %v1952_v46  }
 0x22d   :  { %1948 = vst [vmem:[#allocation11] sm:$0xff] %v1947_v47  }
 0x233   :  { %v2269_v48 = vpop.f32.mrb[4].mxu1 }
 0x234   :  { %v1562_v49 = vadd.f32 %v2269_v48, %v2868_v33  ;;  %v1438_v50 = vpop.f32.mrb[5].mxu1 }
 0x235   :  { %v1560_v51 = vadd.f32 %v2868_v33, %v1438_v50  ;;  %v2270_v52 = vpop.f32.mrb[6].mxu1 }
 0x236   :  { %v1563_v53 = vadd.f32 %v2270_v52, %v2868_v33  ;;  %v1441_v54 = vpop.f32.mrb[7].mxu1  ;;  %v1594_v56 = vmax.f32 %v1562_v49, 0.0 }
 0x237   :  { %v1561_v55 = vadd.f32 %v2868_v33, %v1441_v54  ;;  %v1592_v58 = vmax.f32 %v1560_v51, 0.0 }
 0x238   :  { %v1595_v57 = vmax.f32 %v1563_v53, 0.0 }
 0x239   :  { %v1593_v59 = vmax.f32 %v1561_v55, 0.0 }
 0x23a   :  { %v1962_v60 = vpack.c.bf16 %v1595_v57, %v1594_v56 }
 0x23b   :  { %v1957_v61 = vpack.c.bf16 %v1593_v59, %v1592_v58 }
 0x23c   :  { %2026 = vst [vmem:[#allocation11 + $0x18] sm:$0xff] %v1962_v60  }
 0x23d   :  { %2025 = vst [vmem:[#allocation11 + $0x10] sm:$0xff] %v1957_v61  }
 0x243   :  { %v2273_v62 = vpop.f32.mrb[8].mxu1 }
 0x244   :  { %v1566_v63 = vadd.f32 %v2273_v62, %v2868_v33  ;;  %v1454_v0 = vpop.f32.mrb[9].mxu1 }
 0x245   :  { %v1564_v1 = vadd.f32 %v2868_v33, %v1454_v0  ;;  %v2274_v2 = vpop.f32.mrb[10].mxu1 }
 0x246   :  { %v1567_v3 = vadd.f32 %v2274_v2, %v2868_v33  ;;  %v1457_v4 = vpop.f32.mrb[11].mxu1  ;;  %v1598_v6 = vmax.f32 %v1566_v63, 0.0 }
 0x247   :  { %v1565_v5 = vadd.f32 %v2868_v33, %v1457_v4  ;;  %v1596_v8 = vmax.f32 %v1564_v1, 0.0 }
 0x248   :  { %v1599_v7 = vmax.f32 %v1567_v3, 0.0 }
 0x249   :  { %v1597_v9 = vmax.f32 %v1565_v5, 0.0 }
 0x24a   :  { %v1972_v10 = vpack.c.bf16 %v1599_v7, %v1598_v6 }
 0x24b   :  { %v1967_v11 = vpack.c.bf16 %v1597_v9, %v1596_v8 }
 0x24c   :  { %2028 = vst [vmem:[#allocation11 + $0x28] sm:$0xff] %v1972_v10  }
 0x24d   :  { %2027 = vst [vmem:[#allocation11 + $0x20] sm:$0xff] %v1967_v11  }
 0x253   :  { %v2277_v12 = vpop.f32.mrb[12].mxu1 }
 0x254   :  { %v1570_v13 = vadd.f32 %v2277_v12, %v2868_v33  ;;  %v1470_v14 = vpop.f32.mrb[13].mxu1 }
 0x255   :  { %v1568_v15 = vadd.f32 %v2868_v33, %v1470_v14  ;;  %v2278_v16 = vpop.f32.mrb[14].mxu1 }
 0x256   :  { %v1571_v17 = vadd.f32 %v2278_v16, %v2868_v33  ;;  %v1473_v18 = vpop.f32.mrb[15].mxu1  ;;  %v1602_v20 = vmax.f32 %v1570_v13, 0.0 }
 0x257   :  { %v1569_v19 = vadd.f32 %v2868_v33, %v1473_v18  ;;  %v1600_v22 = vmax.f32 %v1568_v15, 0.0 }
 0x258   :  { %v1603_v21 = vmax.f32 %v1571_v17, 0.0 }
 0x259   :  { %v1601_v23 = vmax.f32 %v1569_v19, 0.0 }
 0x25a   :  { %v1982_v24 = vpack.c.bf16 %v1603_v21, %v1602_v20 }
 0x25b   :  { %v1977_v25 = vpack.c.bf16 %v1601_v23, %v1600_v22 }
 0x25c   :  { %2030 = vst [vmem:[#allocation11 + $0x38] sm:$0xff] %v1982_v24  }
 0x25d   :  { %2029 = vst [vmem:[#allocation11 + $0x30] sm:$0xff] %v1977_v25  }
 0x263   :  { %v2281_v26 = vpop.f32.mrb[16].mxu1 }
 0x264   :  { %v1574_v27 = vadd.f32 %v2281_v26, %v2868_v33  ;;  %v1486_v28 = vpop.f32.mrb[17].mxu1 }
 0x265   :  { %v1572_v29 = vadd.f32 %v2868_v33, %v1486_v28  ;;  %v2282_v30 = vpop.f32.mrb[18].mxu1 }
 0x266   :  { %v1575_v31 = vadd.f32 %v2282_v30, %v2868_v33  ;;  %v1489_v32 = vpop.f32.mrb[19].mxu1  ;;  %v1606_v35 = vmax.f32 %v1574_v27, 0.0 }
 0x267   :  { %v1573_v34 = vadd.f32 %v2868_v33, %v1489_v32  ;;  %v1604_v37 = vmax.f32 %v1572_v29, 0.0 }
 0x268   :  { %v1607_v36 = vmax.f32 %v1575_v31, 0.0 }
 0x269   :  { %v1605_v38 = vmax.f32 %v1573_v34, 0.0 }
 0x26a   :  { %v1992_v39 = vpack.c.bf16 %v1607_v36, %v1606_v35 }
 0x26b   :  { %v1987_v40 = vpack.c.bf16 %v1605_v38, %v1604_v37 }
 0x26c   :  { %2032 = vst [vmem:[#allocation11 + $0x48] sm:$0xff] %v1992_v39  }
 0x26d   :  { %2031 = vst [vmem:[#allocation11 + $0x40] sm:$0xff] %v1987_v40  }
 0x273   :  { %v2285_v41 = vpop.f32.mrb[20].mxu1 }
 0x274   :  { %v1578_v42 = vadd.f32 %v2285_v41, %v2868_v33  ;;  %v1502_v43 = vpop.f32.mrb[21].mxu1 }
 0x275   :  { %v1576_v44 = vadd.f32 %v2868_v33, %v1502_v43  ;;  %v2286_v45 = vpop.f32.mrb[22].mxu1 }
 0x276   :  { %v1579_v46 = vadd.f32 %v2286_v45, %v2868_v33  ;;  %v1505_v47 = vpop.f32.mrb[23].mxu1  ;;  %v1610_v49 = vmax.f32 %v1578_v42, 0.0 }
 0x277   :  { %v1577_v48 = vadd.f32 %v2868_v33, %v1505_v47  ;;  %v1608_v51 = vmax.f32 %v1576_v44, 0.0 }
 0x278   :  { %v1611_v50 = vmax.f32 %v1579_v46, 0.0 }
 0x279   :  { %v1609_v52 = vmax.f32 %v1577_v48, 0.0 }
 0x27a   :  { %v2002_v53 = vpack.c.bf16 %v1611_v50, %v1610_v49 }
 0x27b   :  { %v1997_v54 = vpack.c.bf16 %v1609_v52, %v1608_v51 }
 0x27c   :  { %2034 = vst [vmem:[#allocation11 + $0x58] sm:$0xff] %v2002_v53  }
 0x27d   :  { %2033 = vst [vmem:[#allocation11 + $0x50] sm:$0xff] %v1997_v54  }
 0x283   :  { %v2289_v55 = vpop.f32.mrb[24].mxu1 }
 0x284   :  { %v1582_v56 = vadd.f32 %v2289_v55, %v2868_v33  ;;  %v1518_v57 = vpop.f32.mrb[25].mxu1 }
 0x285   :  { %v1580_v58 = vadd.f32 %v2868_v33, %v1518_v57  ;;  %v2290_v59 = vpop.f32.mrb[26].mxu1 }
 0x286   :  { %v1583_v60 = vadd.f32 %v2290_v59, %v2868_v33  ;;  %v1521_v61 = vpop.f32.mrb[27].mxu1  ;;  %v1614_v63 = vmax.f32 %v1582_v56, 0.0 }
 0x287   :  { %v1581_v62 = vadd.f32 %v2868_v33, %v1521_v61  ;;  %v1612_v1 = vmax.f32 %v1580_v58, 0.0 }
 0x288   :  { %v1615_v0 = vmax.f32 %v1583_v60, 0.0 }
 0x289   :  { %v1613_v2 = vmax.f32 %v1581_v62, 0.0 }
 0x28a   :  { %v2012_v3 = vpack.c.bf16 %v1615_v0, %v1614_v63 }
 0x28b   :  { %v2007_v4 = vpack.c.bf16 %v1613_v2, %v1612_v1 }
 0x28c   :  { %2036 = vst [vmem:[#allocation11 + $0x68] sm:$0xff] %v2012_v3  }
 0x28d   :  { %2035 = vst [vmem:[#allocation11 + $0x60] sm:$0xff] %v2007_v4  }
 0x293   :  { %v2293_v5 = vpop.f32.mrb[28].mxu1 }
 0x294   :  { %v1586_v6 = vadd.f32 %v2293_v5, %v2868_v33  ;;  %v1534_v7 = vpop.f32.mrb[29].mxu1 }
 0x295   :  { %v1584_v8 = vadd.f32 %v2868_v33, %v1534_v7  ;;  %v2294_v9 = vpop.f32.mrb[30].mxu1 }
 0x296   :  { %v1587_v10 = vadd.f32 %v2294_v9, %v2868_v33  ;;  %v1537_v11 = vpop.f32.mrb[31].mxu1  ;;  %v1618_v13 = vmax.f32 %v1586_v6, 0.0 }
 0x297   :  { %v1585_v12 = vadd.f32 %v2868_v33, %v1537_v11  ;;  %v1616_v15 = vmax.f32 %v1584_v8, 0.0 }
 0x298   :  { %v1619_v14 = vmax.f32 %v1587_v10, 0.0 }
 0x299   :  { %v1617_v16 = vmax.f32 %v1585_v12, 0.0 }
 0x29a   :  { %v2022_v17 = vpack.c.bf16 %v1619_v14, %v1618_v13 }
 0x29b   :  { %v2017_v18 = vpack.c.bf16 %v1617_v16, %v1616_v15 }
 0x29c   :  { %2038 = vst [vmem:[#allocation11 + $0x78] sm:$0xff] %v2022_v17  }
 0x29d   :  { %2037 = vst [vmem:[#allocation11 + $0x70] sm:$0xff] %v2017_v18  }
 0x29e   :  { %2532 = shalt.err (!%p2529_p8)
}
 0x29f   :  { %s2533_s9 = scalar_lea.hbm %s2924_s7, 2048 }
 0x2a0   :  { %p2534_p9 = scmp.ne.s32.totalorder %s2924_s7, %s2533_s9  ;;  %p2537_p10 = scmp.lt.u32.totalorder %s2533_s9, %s2924_s7 }
 0x2a2   :  { %p2539_p11 = pnand %p2537_p10, %p2534_p9 }
 0x2a4   :  { %2542 = shalt.err (!%p2539_p11)
}
 0x2a5   :  { %1791 = dma.vmem_to_hbm [thread:$0]  %s1786_s28, 2048, %s2924_s7, [#allocation5], %s2553_s13, %s2553_s13, %s2554_s14  }
 0x2a6   :  { %2549 = dma.done.wait [#allocation5], 2048  }
 0x2a7   :  { %2550 = vsyncadd [#allocation5], 4294965248 }
 0x2a8   :  { %1795 = vsyncpa [#allocation4], 1 }
 0x2a9   :  { %1796 = vsyncpa [#allocation7], 1 }
 0x2aa   :  { %1797 = vsyncpa [#allocation10], 1 }
 0x2ab   :  { %1798 = vsyncpa [#allocation5], 1 }

</bundles_post_ra>
